<compile_context>
chip_gen: v7x
topology: tpu7x:2x2x1
jax: 0.10.0
libtpu: 0.0.40
codegen_flags: <defaults>
</compile_context>

<pallas_src>
import jax
import jax.numpy as jnp
from jax.experimental import pallas as pl
from jax.experimental.pallas import tpu as pltpu


def coord_att_kernel(x_ref, p_ref, eh_ref, ew_ref, w1_ref, b1_ref, w2_ref,
                     b2_ref, o_ref):
    nb, C, HW = x_ref.shape                      # static block shape

    x = x_ref[...]                               # (nb, C, HW), native dtype
    x2 = x.reshape(nb * C, HW)                   # layout-preserving (lane dim kept)

    # Merged H-pool / W-pool (and implicit torch.cat) as one MXU matmul.
    y = jnp.dot(x2, p_ref[...],
                preferred_element_type=jnp.float32)            # (nb*C, H+W)

    # conv1 (1x1, C -> mip) with eval-mode BN folded in; batched over the nb
    # samples via a block-diagonal weight so it stays a plain 2-D matmul.
    z = jnp.dot(w1_ref[...], y,
                preferred_element_type=jnp.float32) + b1_ref[...]  # (nb*mip, H+W)

    # h_swish: v * relu6(v + 3) / 6
    a = z * jnp.clip(z + 3.0, 0.0, 6.0) * (1.0 / 6.0)

    # conv_h / conv_w (mip -> 1) stacked into one weight: rows [0, nb) are the
    # per-sample h-gates, rows [nb, 2*nb) the per-sample w-gates.
    g = jnp.dot(w2_ref[...], a,
                preferred_element_type=jnp.float32)            # (2*nb, H+W)
    gh = jax.nn.sigmoid(g[:nb] + b2_ref[0])      # (nb, H+W); cols >= H unused
    gw = jax.nn.sigmoid(g[nb:] + b2_ref[1])      # (nb, H+W); cols <  H unused

    # Expand both gates back onto the flattened spatial axis (the zero rows of
    # eh / ew mask out the unused columns) and combine into one (nb, HW) gate.
    gate = (jnp.dot(gh, eh_ref[...], preferred_element_type=jnp.float32) *
            jnp.dot(gw, ew_ref[...], preferred_element_type=jnp.float32))

    # out = identity * a_w * a_h : single broadcasted multiply in native dtype.
    o_ref[...] = (x * gate[:, None, :].astype(x.dtype)).astype(o_ref.dtype)


def coord_att_pallas(x, params, eps=1e-5, nb=None):
    N, C, H, W = x.shape
    HW = H * W
    L = H + W
    f32 = jnp.float32
    mip = params["w1"].shape[0]

    itemsize = jnp.dtype(x.dtype).itemsize
    sub_x = max(8, 32 // itemsize)               # sublane multiple for x dtype
    pad = lambda v, m: -(-v // m) * m

    # ---- Per-generation VMEM budget (leave headroom for compiler scratch). ----
    try:
        phys_vmem = int(pltpu.get_tpu_info().vmem_capacity_bytes)
    except Exception:
        phys_vmem = 64 << 20                     # conservative (v7x)
    vmem_cap = (phys_vmem * 3) // 4              # ~48 MiB v7x, ~96 MiB v5e/v6e

    def footprint(nb_):
        # One x/out buffer (padded tile shape).
        tile = nb_ * pad(C, sub_x) * pad(HW, 128) * itemsize
        consts = (pad(HW, sub_x) * pad(L, 128) * itemsize          # P (x dtype)
                  + 2 * pad(L, 8) * pad(HW, 128) * 4               # E_h, E_w
                  + pad(nb_ * mip, 8) * pad(nb_ * C, 128) * 4      # W1 block-diag
                  + pad(nb_ * mip, 8) * 128 * 4                    # b1
                  + pad(2 * nb_, 8) * pad(nb_ * mip, 128) * 4)     # W2 stacked
        # in + out double-buffered, constants double-buffered, + slack.
        return 4 * tile + 2 * consts + (2 << 20)

    # ---- Choose samples per grid step (~4 MiB DMA tiles, HBM-bound op). ----
    if nb is None:
        target = 4 << 20
        slab = pad(C, sub_x) * pad(HW, 128) * itemsize
        nb = max(1, min(N, target // max(slab, 1)))
        while nb > 1 and pl.cdiv(N, nb) < 2:     # keep >= 2 grid steps
            nb -= 1
        while nb > 1 and (N % nb or footprint(nb) > vmem_cap):
            nb -= 1
        # Prefer an even grid length (v7x: 2 TensorCores share the parallel axis).
        if N // nb > 1 and (N // nb) % 2:
            for cand in range(nb, max(0, nb // 2), -1):
                if N % cand == 0 and (N // cand) % 2 == 0:
                    nb = cand
                    break
    assert N % nb == 0, "nb must divide N"
    grid = (N // nb,)

    vmem_limit = int(min(max(footprint(nb), 16 << 20), vmem_cap))
    # TODO(synk): for feature maps whose single-sample pipelined footprint
    # exceeds the v7x cap, split into a pooling/gate pass + rescale pass with
    # C/H tiling instead of keeping whole samples resident.

    # ---- Fold eval-mode BatchNorm into conv1 (one-time host constants). ----
    scale = params["gamma"] * jax.lax.rsqrt(params["rvar"] + eps)    # (mip, 1)
    w1f = (params["w1"] * scale).astype(f32)                         # (mip, C)
    b1f = ((params["b1"] - params["rmean"]) * scale
           + params["beta"]).astype(f32)                             # (mip, 1)

    # ---- Block-diagonal / stacked weights across the nb samples. ----
    eye = jnp.eye(nb, dtype=f32)
    w1blk = jnp.kron(eye, w1f)                                       # (nb*mip, nb*C)
    b1blk = jnp.tile(b1f, (nb, 1))                                   # (nb*mip, 1)
    w2blk = jnp.concatenate(
        [jnp.kron(eye, params["wh"].astype(f32)),                    # h-gates first
         jnp.kron(eye, params["ww"].astype(f32))], axis=0)           # (2*nb, nb*mip)
    b2 = jnp.concatenate(
        [params["bh"].reshape(-1), params["bw"].reshape(-1)]).astype(f32)  # (2,)

    # ---- Merged pooling matrix and gate-expansion matrices. ----
    hw = jnp.arange(HW)
    h_idx = hw // W
    w_idx = hw % W
    ph = (h_idx[:, None] == jnp.arange(H)[None, :]).astype(f32) / W   # (HW, H)
    pw = (w_idx[:, None] == jnp.arange(W)[None, :]).astype(f32) / H   # (HW, W)
    p = jnp.concatenate([ph, pw], axis=1).astype(x.dtype)             # (HW, H+W)

    l_idx = jnp.arange(L)
    eh = ((l_idx[:, None] < H)
          & (h_idx[None, :] == l_idx[:, None])).astype(f32)           # (L, HW)
    ew = ((l_idx[:, None] >= H)
          & (w_idx[None, :] == (l_idx[:, None] - H))).astype(f32)     # (L, HW)

    x_flat = x.reshape(N, C, HW)                                      # lane-dense

    out_flat = pl.pallas_call(
        coord_att_kernel,
        out_shape=jax.ShapeDtypeStruct((N, C, HW), x.dtype),
        grid=grid,
        in_specs=[
            pl.BlockSpec((nb, C, HW), lambda n: (n, 0, 0)),           # x
            pl.BlockSpec((HW, L), lambda n: (0, 0)),                  # P (merged pools)
            pl.BlockSpec((L, HW), lambda n: (0, 0)),                  # E_h
            pl.BlockSpec((L, HW), lambda n: (0, 0)),                  # E_w
            pl.BlockSpec((nb * mip, nb * C), lambda n: (0, 0)),       # conv1 (BN folded)
            pl.BlockSpec((nb * mip, 1), lambda n: (0, 0)),            # conv1 bias
            pl.BlockSpec((2 * nb, nb * mip), lambda n: (0, 0)),       # conv_h/conv_w
            pl.BlockSpec(memory_space=pltpu.MemorySpace.SMEM),        # (bh, bw) scalars
        ],
        out_specs=pl.BlockSpec((nb, C, HW), lambda n: (n, 0, 0)),
        compiler_params=pltpu.CompilerParams(
            dimension_semantics=("parallel",),
            vmem_limit_bytes=vmem_limit),
    )(x_flat, p, eh, ew, w1blk, b1blk, w2blk, b2)

    return out_flat.reshape(N, C, H, W)


def coord_att_ref(x, params, eps=1e-5):
    """Pure-JAX reference mirroring the PyTorch forward (eval-mode BN)."""
    N, C, H, W = x.shape
    x_h = jnp.mean(x, axis=3)                      # (N, C, H)
    x_w = jnp.mean(x, axis=2)                      # (N, C, W)
    y = jnp.concatenate([x_h, x_w], axis=2)        # (N, C, H+W)
    y1 = jnp.einsum("mc,ncl->nml", params["w1"], y) + params["b1"][None]
    inv = jax.lax.rsqrt(params["rvar"] + eps)
    y_bn = (y1 - params["rmean"][None]) * inv[None] * params["gamma"][None] \
        + params["beta"][None]
    act = y_bn * jnp.clip(y_bn + 3.0, 0.0, 6.0) / 6.0
    y_h, y_w = act[:, :, :H], act[:, :, H:]
    a_h = jax.nn.sigmoid(jnp.einsum("om,nml->nol", params["wh"], y_h)
                         + params["bh"][None])     # (N, 1, H)
    a_w = jax.nn.sigmoid(jnp.einsum("om,nml->nol", params["ww"], y_w)
                         + params["bw"][None])     # (N, 1, W)
    return x * a_h[:, :, :, None] * a_w[:, :, None, :]


def make_params(key, inp, reduction=32):
    mip = max(8, inp // reduction)
    ks = jax.random.split(key, 10)
    f32 = jnp.float32
    return {
        "w1":    (0.2 * jax.random.normal(ks[0], (mip, inp))).astype(f32),
        "b1":    (0.1 * jax.random.normal(ks[1], (mip, 1))).astype(f32),
        "gamma": (1.0 + 0.1 * jax.random.normal(ks[2], (mip, 1))).astype(f32),
        "beta":  (0.05 * jax.random.normal(ks[3], (mip, 1))).astype(f32),
        "rmean": (0.1 * jax.random.normal(ks[4], (mip, 1))).astype(f32),
        "rvar":  jax.random.uniform(ks[5], (mip, 1), f32, 0.5, 1.5),
        "wh":    (0.3 * jax.random.normal(ks[6], (1, mip))).astype(f32),
        "bh":    (0.1 * jax.random.normal(ks[7], (1, 1))).astype(f32),
        "ww":    (0.3 * jax.random.normal(ks[8], (1, mip))).astype(f32),
        "bw":    (0.1 * jax.random.normal(ks[9], (1, 1))).astype(f32),
    }


if __name__ == "__main__":
    key = jax.random.PRNGKey(0)
    kx, kp = jax.random.split(key)

    N, C, H, W = 2, 4, 16, 16
    x = jax.random.normal(kx, (N, C, H, W), dtype=jnp.float32)
    params = make_params(kp, inp=C, reduction=32)   # mip = max(8, 4//32) = 8

    out = jax.block_until_ready(coord_att_pallas(x, params))
    ref = coord_att_ref(x, params)

    assert out.shape == (N, C, H, W)
    assert jnp.allclose(out, ref, rtol=1e-4, atol=1e-5), "mismatch vs JAX reference"

    print("KERNEL_OK")
</pallas_src>

<mosaic_0001>
module attributes {stable_mosaic.version = 11 : i64} {
  func.func @coord_att_kernel(%arg0: i32, %arg1: memref<1x4x256xf32, #tpu.memory_space<vmem>>, %arg2: memref<256x32xf32, #tpu.memory_space<vmem>>, %arg3: memref<32x256xf32, #tpu.memory_space<vmem>>, %arg4: memref<32x256xf32, #tpu.memory_space<vmem>>, %arg5: memref<8x4xf32, #tpu.memory_space<vmem>>, %arg6: memref<8x1xf32, #tpu.memory_space<vmem>>, %arg7: memref<2x8xf32, #tpu.memory_space<vmem>>, %arg8: memref<2xf32, #tpu.memory_space<smem>>, %arg9: memref<1x4x256xf32, #tpu.memory_space<vmem>>) attributes {dimension_semantics = [#tpu.dimension_semantics<parallel>], iteration_bounds = array<i64: 2>, scalar_prefetch = 0 : i64, scratch_operands = 0 : i64, tpu.core_type = #tpu.core_type<tc>, window_params = [{transform_indices = @transform_0, window_bounds = array<i64: 1, 4, 256>}, {pipeline_mode = #tpu.pipeline_mode<synchronous>, transform_indices = @transform_1, window_bounds = array<i64: 256, 32>}, {pipeline_mode = #tpu.pipeline_mode<synchronous>, transform_indices = @transform_2, window_bounds = array<i64: 32, 256>}, {pipeline_mode = #tpu.pipeline_mode<synchronous>, transform_indices = @transform_3, window_bounds = array<i64: 32, 256>}, {pipeline_mode = #tpu.pipeline_mode<synchronous>, transform_indices = @transform_4, window_bounds = array<i64: 8, 4>}, {pipeline_mode = #tpu.pipeline_mode<synchronous>, transform_indices = @transform_5, window_bounds = array<i64: 8, 1>}, {pipeline_mode = #tpu.pipeline_mode<synchronous>, transform_indices = @transform_6, window_bounds = array<i64: 2, 8>}, {transform_indices = @transform_7, window_bounds = array<i64: 2>}, {transform_indices = @transform_8, window_bounds = array<i64: 1, 4, 256>}]} {
    %c0 = arith.constant 0 : index
    %c0_0 = arith.constant 0 : index
    %c0_1 = arith.constant 0 : index
    %0 = vector.load %arg1[%c0, %c0_0, %c0_1] : memref<1x4x256xf32, #tpu.memory_space<vmem>>, vector<1x4x256xf32>
    %1 = vector.shape_cast %0 : vector<1x4x256xf32> to vector<4x256xf32>
    %c0_2 = arith.constant 0 : index
    %c0_3 = arith.constant 0 : index
    %2 = vector.load %arg2[%c0_2, %c0_3] : memref<256x32xf32, #tpu.memory_space<vmem>>, vector<256x32xf32>
    %cst = arith.constant dense<0.000000e+00> : vector<4x32xf32>
    %3 = tpu.matmul %1, %2, %cst {dimension_numbers = #tpu.dot_dimension_numbers<[1], [0], [0], [1], [0, 0, 1, 1], [], []>} : vector<4x256xf32>, vector<256x32xf32>, vector<4x32xf32> -> vector<4x32xf32>
    %c0_4 = arith.constant 0 : index
    %c0_5 = arith.constant 0 : index
    %4 = vector.load %arg5[%c0_4, %c0_5] : memref<8x4xf32, #tpu.memory_space<vmem>>, vector<8x4xf32>
    %cst_6 = arith.constant dense<0.000000e+00> : vector<8x32xf32>
    %5 = tpu.matmul %4, %3, %cst_6 {dimension_numbers = #tpu.dot_dimension_numbers<[1], [0], [0], [1], [0, 0, 1, 1], [], []>} : vector<8x4xf32>, vector<4x32xf32>, vector<8x32xf32> -> vector<8x32xf32>
    %c0_7 = arith.constant 0 : index
    %c0_8 = arith.constant 0 : index
    %6 = vector.load %arg6[%c0_7, %c0_8] : memref<8x1xf32, #tpu.memory_space<vmem>>, vector<8x1xf32>
    %7 = vector.broadcast %6 : vector<8x1xf32> to vector<8x32xf32>
    %8 = arith.addf %5, %7 : vector<8x32xf32>
    %cst_9 = arith.constant 3.000000e+00 : f32
    %9 = vector.broadcast %cst_9 : f32 to vector<8x32xf32>
    %10 = arith.addf %8, %9 : vector<8x32xf32>
    %cst_10 = arith.constant 0.000000e+00 : f32
    %cst_11 = arith.constant 6.000000e+00 : f32
    %11 = vector.broadcast %cst_10 : f32 to vector<8x32xf32>
    %12 = arith.maximumf %11, %10 : vector<8x32xf32>
    %13 = vector.broadcast %cst_11 : f32 to vector<8x32xf32>
    %14 = arith.minimumf %13, %12 : vector<8x32xf32>
    %15 = arith.mulf %8, %14 : vector<8x32xf32>
    %cst_12 = arith.constant 0.166666672 : f32
    %16 = vector.broadcast %cst_12 : f32 to vector<8x32xf32>
    %17 = arith.mulf %15, %16 : vector<8x32xf32>
    %c0_13 = arith.constant 0 : index
    %c0_14 = arith.constant 0 : index
    %18 = vector.load %arg7[%c0_13, %c0_14] : memref<2x8xf32, #tpu.memory_space<vmem>>, vector<2x8xf32>
    %cst_15 = arith.constant dense<0.000000e+00> : vector<2x32xf32>
    %19 = tpu.matmul %18, %17, %cst_15 {dimension_numbers = #tpu.dot_dimension_numbers<[1], [0], [0], [1], [0, 0, 1, 1], [], []>} : vector<2x8xf32>, vector<8x32xf32>, vector<2x32xf32> -> vector<2x32xf32>
    %20 = vector.extract_strided_slice %19 {offsets = [0, 0], sizes = [1, 32], strides = [1, 1]} : vector<2x32xf32> to vector<1x32xf32>
    %c0_16 = arith.constant 0 : index
    %21 = memref.load %arg8[%c0_16] : memref<2xf32, #tpu.memory_space<smem>>
    %22 = vector.broadcast %21 : f32 to vector<1x32xf32>
    %23 = arith.addf %20, %22 : vector<1x32xf32>
    %24 = arith.negf %23 : vector<1x32xf32>
    %25 = math.exp %24 : vector<1x32xf32>
    %cst_17 = arith.constant 1.000000e+00 : f32
    %26 = vector.broadcast %cst_17 : f32 to vector<1x32xf32>
    %27 = arith.addf %26, %25 : vector<1x32xf32>
    %28 = arith.divf %26, %27 : vector<1x32xf32>
    %29 = vector.extract_strided_slice %19 {offsets = [1, 0], sizes = [1, 32], strides = [1, 1]} : vector<2x32xf32> to vector<1x32xf32>
    %c1 = arith.constant 1 : index
    %30 = memref.load %arg8[%c1] : memref<2xf32, #tpu.memory_space<smem>>
    %31 = vector.broadcast %30 : f32 to vector<1x32xf32>
    %32 = arith.addf %29, %31 : vector<1x32xf32>
    %33 = arith.negf %32 : vector<1x32xf32>
    %34 = math.exp %33 : vector<1x32xf32>
    %cst_18 = arith.constant 1.000000e+00 : f32
    %35 = vector.broadcast %cst_18 : f32 to vector<1x32xf32>
    %36 = arith.addf %35, %34 : vector<1x32xf32>
    %37 = arith.divf %35, %36 : vector<1x32xf32>
    %c0_19 = arith.constant 0 : index
    %c0_20 = arith.constant 0 : index
    %38 = vector.load %arg3[%c0_19, %c0_20] : memref<32x256xf32, #tpu.memory_space<vmem>>, vector<32x256xf32>
    %cst_21 = arith.constant dense<0.000000e+00> : vector<1x256xf32>
    %39 = tpu.matmul %28, %38, %cst_21 {dimension_numbers = #tpu.dot_dimension_numbers<[1], [0], [0], [1], [0, 0, 1, 1], [], []>} : vector<1x32xf32>, vector<32x256xf32>, vector<1x256xf32> -> vector<1x256xf32>
    %c0_22 = arith.constant 0 : index
    %c0_23 = arith.constant 0 : index
    %40 = vector.load %arg4[%c0_22, %c0_23] : memref<32x256xf32, #tpu.memory_space<vmem>>, vector<32x256xf32>
    %cst_24 = arith.constant dense<0.000000e+00> : vector<1x256xf32>
    %41 = tpu.matmul %37, %40, %cst_24 {dimension_numbers = #tpu.dot_dimension_numbers<[1], [0], [0], [1], [0, 0, 1, 1], [], []>} : vector<1x32xf32>, vector<32x256xf32>, vector<1x256xf32> -> vector<1x256xf32>
    %42 = arith.mulf %39, %41 : vector<1x256xf32>
    %43 = vector.shape_cast %42 : vector<1x256xf32> to vector<1x1x256xf32>
    %44 = vector.broadcast %43 : vector<1x1x256xf32> to vector<1x4x256xf32>
    %45 = arith.mulf %0, %44 : vector<1x4x256xf32>
    %c0_25 = arith.constant 0 : index
    %c0_26 = arith.constant 0 : index
    %c0_27 = arith.constant 0 : index
    %46 = vector.load %arg9[%c0_25, %c0_26, %c0_27] : memref<1x4x256xf32, #tpu.memory_space<vmem>>, vector<1x4x256xf32>
    tpu.vector_store %arg9[%c0_25, %c0_26, %c0_27], %45 {strides = array<i32>} : memref<1x4x256xf32, #tpu.memory_space<vmem>>, vector<1x4x256xf32>,
    return
  }
  func.func @transform_0(%arg0: i32) -> (i32, i32, i32) {
    %c0_i32 = arith.constant 0 : i32
    %c0_i32_0 = arith.constant 0 : i32
    %c0_i32_1 = arith.constant 0 : i32
    return %arg0, %c0_i32, %c0_i32_0 : i32, i32, i32
  }
  func.func @transform_1(%arg0: i32) -> (i32, i32) {
    %c0_i32 = arith.constant 0 : i32
    %c0_i32_0 = arith.constant 0 : i32
    %c0_i32_1 = arith.constant 0 : i32
    return %c0_i32, %c0_i32_0 : i32, i32
  }
  func.func @transform_2(%arg0: i32) -> (i32, i32) {
    %c0_i32 = arith.constant 0 : i32
    %c0_i32_0 = arith.constant 0 : i32
    %c0_i32_1 = arith.constant 0 : i32
    return %c0_i32, %c0_i32_0 : i32, i32
  }
  func.func @transform_3(%arg0: i32) -> (i32, i32) {
    %c0_i32 = arith.constant 0 : i32
    %c0_i32_0 = arith.constant 0 : i32
    %c0_i32_1 = arith.constant 0 : i32
    return %c0_i32, %c0_i32_0 : i32, i32
  }
  func.func @transform_4(%arg0: i32) -> (i32, i32) {
    %c0_i32 = arith.constant 0 : i32
    %c0_i32_0 = arith.constant 0 : i32
    %c0_i32_1 = arith.constant 0 : i32
    return %c0_i32, %c0_i32_0 : i32, i32
  }
  func.func @transform_5(%arg0: i32) -> (i32, i32) {
    %c0_i32 = arith.constant 0 : i32
    %c0_i32_0 = arith.constant 0 : i32
    %c0_i32_1 = arith.constant 0 : i32
    return %c0_i32, %c0_i32_0 : i32, i32
  }
  func.func @transform_6(%arg0: i32) -> (i32, i32) {
    %c0_i32 = arith.constant 0 : i32
    %c0_i32_0 = arith.constant 0 : i32
    %c0_i32_1 = arith.constant 0 : i32
    return %c0_i32, %c0_i32_0 : i32, i32
  }
  func.func @transform_7(%arg0: i32) -> i32 {
    %c0_i32 = arith.constant 0 : i32
    %c0_i32_0 = arith.constant 0 : i32
    return %c0_i32 : i32
  }
  func.func @transform_8(%arg0: i32) -> (i32, i32, i32) {
    %c0_i32 = arith.constant 0 : i32
    %c0_i32_0 = arith.constant 0 : i32
    %c0_i32_1 = arith.constant 0 : i32
    return %arg0, %c0_i32, %c0_i32_0 : i32, i32, i32
  }
}

</mosaic_0001>

<bundles_post_ra>
// kernel: tpu_custom_call.1
= control target key start
LH: loop header
LB: loop body
LE: loop exit
PB: predicated region body
PF: predicated region fallthrough
CT: control target
= control target key end

     0   :  { %13 = vsyncpa [#allocation4], 0  ;;  %s1475_s0 = inlined_call_operand.vmem [shape: f32[2,4,256], index: 0, kind: input, shape index: {}]   ;;  %s1476_s1 = inlined_call_operand.vmem [shape: f32[256,32], index: 1, kind: input, shape index: {}]   ;;  %s1477_s2 = inlined_call_operand.vmem [shape: f32[32,256], index: 2, kind: input, shape index: {}]   ;;  %s1478_s3 = inlined_call_operand.vmem [shape: f32[32,256], index: 3, kind: input, shape index: {}]   ;;  %s1479_s4 = inlined_call_operand.vmem [shape: f32[8,4], index: 4, kind: input, shape index: {}]   ;;  %s1480_s5 = inlined_call_operand.vmem [shape: f32[8,1], index: 5, kind: input, shape index: {}]   ;;  %s1481_s6 = inlined_call_operand.vmem [shape: f32[2,8], index: 6, kind: input, shape index: {}]   ;;  %s1482_s7 = inlined_call_operand.vmem [shape: f32[2], index: 7, kind: input, shape index: {}]   ;;  %s1483_s8 = inlined_call_operand.hbm [shape: f32[2,4,256], index: 8, kind: output, shape index: {}]  }
   0x1   :  { %14 = vsyncpa [#allocation3], 0 }
   0x2   :  { %16 = vsyncpa [#allocation3 + $0x1], 0  ;;  %s1192_s27 = smov 0   ;;  %s1194_s28 = smov 0  }
   0x3   :  { %s1196_s29 = smov 0   ;;  %s1198_s30 = smov 0  }
   0x4 LB: > { %s1213_s9 = sadd.s32 4294967295, %s1140_s30   ;;  %s875_s10 = sadd.s32 4294967294, %s1140_s30   ;;  %s1140_s30 = sphi %s1198_s30, %s1490_s30   ;;  %s1136_s29 = sphi %s1196_s29, %s1489_s29   ;;  %s1132_s28 = sphi %s1194_s28, %s1488_s28   ;;  %s1128_s27 = sphi %s1192_s27, %s1487_s27  }
   0x5   : > { %s1217_s11 = sadd.s32 1, %s1140_s30   ;;  %s202_s12 = sadd.s32 1, %s1136_s29 }
   0x6   : > { %s199_s13 = ssub.s32 %s1140_s30, %s1217_s11  ;;  %p212_p0 = scmp.ne.s32.totalorder %s1136_s29, %s1132_s28 }
   0x7   : > { %p200_p1 = scmp.eq.s32.totalorder %s199_s13, 0  ;;  %p213_p2 = scmp.eq.s32.totalorder %s1213_s9, 1 }
   0x8   : > { %p218_p3 = scmp.ne.s32.totalorder %s1132_s28, %s1128_s27  ;;  %p219_p4 = scmp.eq.s32.totalorder %s875_s10, 1 }
   0x9   : > { %s1228_s14 = scalar_select %p200_p1, %s1136_s29, %s202_s12  }
   0xa   : > { %p1230_p5 = por %p213_p2, %p212_p0  ;;  %p1234_p6 = por %p219_p4, %p218_p3 }
   0xb   : > { %p876_p7 = scmp.ge.s32.totalorder %s1140_s30, 1  ;;  %p226_p8 = scmp.lt.s32.totalorder %s1140_s30, 3 }
   0xc   : > { %p1010_p9 = scmp.eq.s32.totalorder %s1213_s9, 0  ;;  %s257_s20 = sshll.u32 %s1482_s7, 4  ;;  %s258_s20 = int_to_ptr.vmem [resolvable:$true] %s257_s20 }
   0xd   : > { %p1241_p10 = pnand %p876_p7, %p226_p8  ;;  %s1059_s21 = scalar_lea.vmem %s258_s20, 16 }
   0xe   : > { %p1060_p13 = scmp.ne.s32.totalorder %s258_s20, %s1059_s21  ;;  %p1067_p3 = scmp.lt.s32.totalorder %s258_s20, %s258_s20 }
   0xf   : > { %p1002_p11 = pneg %p1241_p10  ;;  %p1068_p4 = scmp.lt.s32.totalorder %s1059_s21, %s1059_s21 }
  0x11   : > { %p1003_p12 = pnand %p1010_p9, %p1002_p11  ;;  %p1069_p7 = por %p1068_p4, %p1067_p3 }
  0x13   : > { %p1061_p0 = pneg %p1003_p12 }
  0x15   : > { %p1062_p1 = pnand %p1061_p0, %p1060_p13 }
  0x17   : > { %p1063_p2 = pneg %p1062_p1 }
  0x19   : > { %p1070_p8 = pnand %p1069_p7, %p1063_p2 }
  0x1b   : > { %1073 = shalt.err (!%p1070_p8)
}
  0x1c   : > { %s1142_s22 = smov [#allocation2]   ;;  %278 = sbr.rel (%p1241_p10) target bundleno = 997 (0x3e5), region = 52 }
  0x1d   : > { %1005 = dma.vmem_to_smem (!%p1003_p12), %s258_s20, 16, %s1142_s22, [#allocation4]  }
  0x23   : > { %1119 = dma.done.wait (%p1010_p9), [#allocation4], 16  }
  0x24   : > { %1121 = vsyncadd (%p1010_p9), [#allocation4], 4294967280 }
  0x25   : > { %284 = sfence }
  0x26   : > { %v335_v0 = vld [vmem:[%s1476_s1 + $0x80] sm:$0xff]  ;;  %v336_v1 = vld [vmem:[%s1476_s1 + $0x88] sm:$0xff]  ;;  %p313_p10 = scmp.lt.s32.totalorder %s1213_s9, 1  ;;  %v337_v5 = vld [vmem:[%s1476_s1 + $0x90] sm:$0xff]  ;;  %v1143_v50 = vmov 0.0   ;;  %vm1144_vm0 = vmmov 0  }
  0x27   : > { %v319_v2 = vld [vmem:[%s1476_s1] sm:$0xff]  ;;  %v948_v3 = vpack.c.bf16 %v336_v1, %v335_v0  ;;  %v320_v4 = vld [vmem:[%s1476_s1 + $0x8] sm:$0xff]  ;;  %v338_v6 = vld [vmem:[%s1476_s1 + $0x98] sm:$0xff]  ;;  %938 = vmatprep.subr.mxu1 %v1143_v50  ;;  %940 = vmatprep.mubr.msk.f32.mxu1 %vm1144_vm0, %v1143_v50  ;;  %v1145_v52 = vmov 0   ;;  %vm435_vm1 = vcmask 1043456   ;;  %vm431_vm2 = vcmask 31744  }
  0x28   : > { %v950_v7 = vpack.c.bf16 %v320_v4, %v319_v2  ;;  %v952_v8 = vpack.c.bf16 %v338_v6, %v337_v5  ;;  %v321_v9 = vld [vmem:[%s1476_s1 + $0x10] sm:$0xff]  ;;  %v322_v10 = vld [vmem:[%s1476_s1 + $0x18] sm:$0xff]  ;;  %v339_v11 = vld [vmem:[%s1476_s1 + $0xa0] sm:$0xff]  ;;  %s314_s12 = scalar_select %p313_p10, %s1213_s9, 1  ;;  %1049 = vset.pattern.permute.xlu0 %v1145_v52  ;;  %vm515_vm3 = vcmask 64512   ;;  %vm615_vm4 = vcmask 261120  }
  0x29   : > { %949 = vmatprep.subr.bf16.mxu0 %v948_v3  ;;  %v340_v12 = vld [vmem:[%s1476_s1 + $0xa8] sm:$0xff]  ;;  %v954_v13 = vpack.c.bf16 %v322_v10, %v321_v9  ;;  %v323_v15 = vld [vmem:[%s1476_s1 + $0x20] sm:$0xff]  ;;  %v341_v17 = vld [vmem:[%s1476_s1 + $0xb0] sm:$0xff]  ;;  %s589_s10 = sld [smem:[#allocation2]]  ;;  %s898_s19 = sshll.u32 %s1213_s9, 7 }
  0x2a   : > { %951 = vmatpush3.bf16.msra.mxu0 %v950_v7  ;;  %s897_s18 = sshll.u32 %s314_s12, 3  ;;  %v956_v14 = vpack.c.bf16 %v340_v12, %v339_v11  ;;  %v324_v16 = vld [vmem:[%s1476_s1 + $0x28] sm:$0xff]  ;;  %v342_v18 = vld [vmem:[%s1476_s1 + $0xb8] sm:$0xff]  ;;  %v325_v21 = vld [vmem:[%s1476_s1 + $0x30] sm:$0xff]  ;;  %s888_s12 = sld [smem:[#allocation2 + $0x1]] }
  0x2b   : > { %953 = vmatprep.subr.bf16.mxu0 %v952_v8  ;;  %s317_s13 = scalar_lea.vmem %s1475_s0, %s897_s18  ;;  %v958_v19 = vpack.c.bf16 %v324_v16, %v323_v15  ;;  %v960_v20 = vpack.c.bf16 %v342_v18, %v341_v17  ;;  %v326_v22 = vld [vmem:[%s1476_s1 + $0x38] sm:$0xff]  ;;  %v343_v23 = vld [vmem:[%s1476_s1 + $0xc0] sm:$0xff]  ;;  %v344_v24 = vld [vmem:[%s1476_s1 + $0xc8] sm:$0xff]  ;;  %s1433_s23 = scalar_lea.hbm %s1483_s8, %s898_s19 }
  0x2c   : > { %v1317_v25 = vld [vmem:[%s317_s13] sm:$0xff]  ;;  %v962_v27 = vpack.c.bf16 %v326_v22, %v325_v21  ;;  %v964_v28 = vpack.c.bf16 %v344_v24, %v343_v23  ;;  %v328_v30 = vld [vmem:[%s1476_s1 + $0x48] sm:$0xff]  ;;  %v345_v31 = vld [vmem:[%s1476_s1 + $0xd0] sm:$0xff]  ;;  %s1146_s9 = smov [#allocation5]  }
  0x2d   : > { %v352_v26 = vcombine.high %v1317_v25, %v1317_v25  ;;  %v327_v29 = vld [vmem:[%s1476_s1 + $0x40] sm:$0xff]  ;;  %v346_v32 = vld [vmem:[%s1476_s1 + $0xd8] sm:$0xff]  ;;  %v329_v35 = vld [vmem:[%s1476_s1 + $0x50] sm:$0xff]  ;;  %s1078_s18 = sshll.u32 %s1146_s9, 4  ;;  %s1079_s18 = int_to_ptr.vmem [resolvable:$false] %s1078_s18 }
  0x2e   : > { %955 = vmatpush3.bf16.msra.mxu0 %v954_v13  ;;  %v966_v33 = vpack.c.bf16 %v328_v30, %v327_v29  ;;  %v968_v34 = vpack.c.bf16 %v346_v32, %v345_v31  ;;  %v330_v36 = vld [vmem:[%s1476_s1 + $0x58] sm:$0xff]  ;;  %v347_v37 = vld [vmem:[%s1476_s1 + $0xe0] sm:$0xff]  ;;  %v348_v38 = vld [vmem:[%s1476_s1 + $0xe8] sm:$0xff]  ;;  %s1080_s26 = scalar_lea.vmem %s1079_s18, 256 }
  0x2f   : > { %957 = vmatprep.subr.bf16.mxu0 %v956_v14  ;;  %418 = vmatprep.mubr.f32.mxu0 %v352_v26  ;;  %v970_v39 = vpack.c.bf16 %v330_v36, %v329_v35  ;;  %v972_v40 = vpack.c.bf16 %v348_v38, %v347_v37  ;;  %v331_v41 = vld [vmem:[%s1476_s1 + $0x60] sm:$0xff]  ;;  %v332_v42 = vld [vmem:[%s1476_s1 + $0x68] sm:$0xff]  ;;  %v349_v43 = vld [vmem:[%s1476_s1 + $0xf0] sm:$0xff]  ;;  %v590_v18 = vstv %s589_s10 }
  0x30   : > { %v350_v44 = vld [vmem:[%s1476_s1 + $0xf8] sm:$0xff]  ;;  %v974_v45 = vpack.c.bf16 %v332_v42, %v331_v41  ;;  %v333_v47 = vld [vmem:[%s1476_s1 + $0x70] sm:$0xff]  ;;  %v425_v51 = vld [vmem:[%s1480_s5] sm:$0xff] }
  0x31   : > { %v976_v46 = vpack.c.bf16 %v350_v44, %v349_v43  ;;  %v334_v48 = vld [vmem:[%s1476_s1 + $0x78] sm:$0xff]  ;;  %428 = vperm.xlu0 %1049, %v425_v51   ;;  %v424_v56 = vld [vmem:[%s1479_s4] sm:$0xff]  ;;  %v608_v3 = vld [vmem:[%s1477_s2 + $0x8] sm:$0xff]  ;;  %v775_v43 = vlaneseq }
  0x32   : > { %959 = vmatpush3.bf16.msra.mxu0 %v958_v19  ;;  %v978_v49 = vpack.c.bf16 %v334_v48, %v333_v47  ;;  %v514_v2 = vld [vmem:[%s1481_s6] sm:$0x3]  ;;  %v610_v4 = vld [vmem:[%s1477_s2 + $0x18] sm:$0xff]  ;;  %v609_v7 = vld [vmem:[%s1477_s2 + $0x10] sm:$0xff]  ;;  %v599_v19 = vstv %s888_s12  ;;  %s310_s12 = sand.u32 1, %s1132_s28  }
  0x33   : > { %961 = vmatprep.subr.bf16.mxu0 %v960_v20  ;;  %v980_v5 = vpack.c.bf16 %v610_v4, %v608_v3  ;;  %v607_v6 = vld [vmem:[%s1477_s2] sm:$0xff]  ;;  %v612_v9 = vld [vmem:[%s1477_s2 + $0x28] sm:$0xff]  ;;  %v614_v10 = vld [vmem:[%s1477_s2 + $0x38] sm:$0xff]  ;;  %s881_s17 = sshll.u32 %s310_s12, 3  ;;  %s790_s24 = scalar_lea.sflag [#allocation3], %s310_s12 }
  0x34   : > { %v982_v8 = vpack.c.bf16 %v609_v7, %v607_v6  ;;  %v984_v11 = vpack.c.bf16 %v614_v10, %v612_v9  ;;  %v611_v12 = vld [vmem:[%s1477_s2 + $0x20] sm:$0xff]  ;;  %v613_v13 = vld [vmem:[%s1477_s2 + $0x30] sm:$0xff]  ;;  %v691_v15 = vld [vmem:[%s1478_s3 + $0x8] sm:$0xff]  ;;  %s312_s13 = scalar_lea.vmem [#allocation5], %s881_s17 }
  0x35   : > { %v986_v14 = vpack.c.bf16 %v613_v13, %v611_v12  ;;  %v693_v16 = vld [vmem:[%s1478_s3 + $0x18] sm:$0xff]  ;;  %v690_v31 = vld [vmem:[%s1478_s3] sm:$0xff]  ;;  %v692_v32 = vld [vmem:[%s1478_s3 + $0x10] sm:$0xff]  ;;  %s804_s20 = sshll.u32 %s312_s13, 4  ;;  %s1435_s20 = int_to_ptr.vmem [resolvable:$true] %s804_s20 }
  0x36   : > { %963 = vmatpush3.bf16.msra.mxu0 %v962_v27  ;;  %v988_v17 = vpack.c.bf16 %v693_v16, %v691_v15  ;;  %v990_v35 = vpack.c.bf16 %v692_v32, %v690_v31  ;;  %v694_v37 = vld [vmem:[%s1478_s3 + $0x20] sm:$0xff]  ;;  %v696_v38 = vld [vmem:[%s1478_s3 + $0x30] sm:$0xff]  ;;  %s1074_s25 = scalar_lea.vmem %s1435_s20, 128  ;;  %p1081_p13 = scmp.lt.s32.totalorder %s1435_s20, %s1079_s18 }
  0x37   : > { %965 = vmatprep.subr.bf16.mxu0 %v964_v28  ;;  %p1075_p9 = scmp.ne.s32.totalorder %s1435_s20, %s1074_s25  ;;  %p1082_p0 = scmp.lt.s32.totalorder %s1080_s26, %s1074_s25 }
  0x39   : > { %p1076_p11 = pnand %p1075_p9, %p1230_p5  ;;  %p1083_p1 = por %p1082_p0, %p1081_p13 }
  0x3a   : > { %967 = vmatpush3.bf16.msra.mxu0 %v966_v33  ;;  %v695_v33 = vld [vmem:[%s1478_s3 + $0x28] sm:$0xff] }
  0x3b   : > { %969 = vmatprep.subr.bf16.mxu0 %v968_v34  ;;  %v697_v34 = vld [vmem:[%s1478_s3 + $0x38] sm:$0xff]  ;;  %p1077_p12 = pneg %p1076_p11 }
  0x3c   : > { %v992_v36 = vpack.c.bf16 %v697_v34, %v695_v33 }
  0x3d   : > { %p1084_p2 = pnand %p1083_p1, %p1077_p12 }
  0x3e   : > { %971 = vmatpush3.bf16.msra.mxu0 %v970_v39 }
  0x3f   : > { %973 = vmatprep.subr.bf16.mxu0 %v972_v40  ;;  %v994_v40 = vpack.c.bf16 %v696_v38, %v694_v37 }
  0x42   : > { %975 = vmatpush3.bf16.msra.mxu0 %v974_v45 }
  0x43   : > { %977 = vmatprep.subr.bf16.mxu0 %v976_v46  ;;  %v776_v46 = vshrl.u32 %v775_v43, 7 }
  0x45   : > { %v777_v47 = vsub.s32 0, %v776_v46 }
  0x46   : > { %979 = vmatpush3.bf16.msra.mxu0 %v978_v49 }
  0x49   : > { %419 = vmatmul.mubr.f32.vlgmr.msra.gmra.mrb[0].mxu0 %v1317_v25 }
  0xb0   : > { %v429_v57 = vpop.permute.xlu0 %428 }
 0x11c   : > { %v931_v53 = vpop.f32.mrb[0].mxu0 }
 0x11d   : > { %v932_v54 = vpop.f32.mrb[1].mxu0 }
 0x11e   : > { %v933_v55 = vadd.f32 %v932_v54, %v931_v53 }
 0x120   : > { %939 = vmatpush3.msk.msra.mxu1 %vm435_vm1, %v933_v55 }
 0x121   : > { %941 = vmatmul.mubr.msk.f32.vlgmr.msra.gmra.mrb[0].mxu1 %vm431_vm2, %v424_v56  ;;  %943 = vmatprep.subr.mxu1 %v1143_v50 }
 0x122   : > { %945 = vmatprep.mubr.msk.f32.mxu1 %vm1144_vm0, %v1143_v50 }
 0x1f4   : > { %v505_v58 = vpop.f32.mrb[0].mxu1 }
 0x1f5   : > { %v506_v59 = vadd.f32 %v505_v58, %v429_v57  ;;  %v942_v60 = vpop.f32.mrb[1].mxu1 }
 0x1f7   : > { %v509_v61 = vadd.f32 3.0, %v506_v59 }
 0x1f9   : > { %v510_v62 = vmax.f32 %v509_v61, 0.0 }
 0x1fb   : > { %v511_v63 = vmin.f32 %v510_v62, 6.0 }
 0x1fd   : > { %v512_v0 = vmul.f32 %v511_v63, %v506_v59 }
 0x1ff   : > { %v513_v1 = vmul.f32 0.16666667, %v512_v0 }
 0x201   : > { %944 = vmatpush3.msra.mxu1 %v513_v1 }
 0x202   : > { %946 = vmatmul.mubr.msk.f32.vlgmr.msra.gmra.mrb[2].mxu1 %vm515_vm3, %v514_v2  ;;  %981 = vmatprep.subr.bf16.mxu1 %v980_v5 }
 0x203   : > { %683 = vmatprep.mubr.f32.mxu1 %v1143_v50  ;;  %983 = vmatpush1.bf16.msra.mxu1 %v982_v8 }
 0x204   : > { %985 = vmatprep.subr.bf16.mxu1 %v984_v11 }
 0x207   : > { %987 = vmatpush1.bf16.msra.mxu1 %v986_v14 }
 0x208   : > { %989 = vmatprep.subr.bf16.mxu1 %v988_v17 }
 0x2d5   : > { %v585_v20 = vpop.f32.mrb[2].mxu1 }
 0x2d6   : > { %v591_v21 = vadd.f32 %v590_v18, %v585_v20  ;;  %v600_v22 = vadd.f32 %v599_v19, %v585_v20  ;;  %v947_v23 = vpop.f32.mrb[3].mxu1 }
 0x2d8   : > { %v887_v24 = vmul.f32 -1.442695, %v591_v21  ;;  %v889_v26 = vmul.f32 -1.442695, %v600_v22 }
 0x2da   : > { %1051 = vpow2.f32 %v887_v24 }
 0x2db   : > { %1053 = vpow2.f32 %v889_v26 }
 0x2e4   : > { %v1052_v27 = vpop.eup %1051 }
 0x2e5   : > { %v1054_v28 = vpop.eup %1053  ;;  %v595_v29 = vadd.f32 1.0, %v1052_v27 }
 0x2e6   : > { %v604_v30 = vadd.f32 1.0, %v1054_v28 }
 0x2e7   : > { %1055 = vrcp.f32 %v595_v29 }
 0x2e8   : > { %1057 = vrcp.f32 %v604_v30 }
 0x2f1   : > { %v1056_v39 = vpop.eup %1055 }
 0x2f2   : > { %890 = vmatmul.mubr.msk.f32.vlgmr.msra.gmra.mrb[4].mxu1 %vm615_vm4, %v1056_v39  ;;  %v1058_v41 = vpop.eup %1057 }
 0x2f3   : > { %991 = vmatpush1.bf16.msra.mxu1 %v990_v35  ;;  %766 = vmatprep.mubr.f32.mxu1 %v1143_v50  ;;  %v699_v42 = vrot.slane %v1058_v41, 1 }
 0x2f4   : > { %993 = vmatprep.subr.bf16.mxu1 %v992_v36 }
 0x2f7   : > { %995 = vmatpush1.bf16.msra.mxu1 %v994_v40 }
 0x2fa   : > { %891 = vmatmul.mubr.msk.f32.vlgmr.msra.gmra.mrb[6].mxu1 %vm615_vm4, %v699_v42 }
 0x3c5   : > { %v685_v44 = vpop.f32.mrb[4].mxu1 }
 0x3c6   : > { %v687_v45 = vpop.f32.mrb[5].mxu1 }
 0x3cd   : > { %v768_v48 = vpop.f32.mrb[6].mxu1 }
 0x3ce   : > { %v773_v49 = vmul.f32 %v768_v48, %v685_v44  ;;  %v770_v51 = vpop.f32.mrb[7].mxu1 }
 0x3cf   : > { %v774_v52 = vmul.f32 %v770_v51, %v687_v45 }
 0x3d0   : > { %v778_v53 = vrot.slane %v773_v49, %v777_v47 }
 0x3d1   : > { %v782_v50 = vrot.slane %v774_v52, %v777_v47 }
 0x3d3   : > { %v785_v54 = vcombine.low %v778_v53, %v782_v50 }
 0x3d5   : > { %v787_v55 = vmul.f32 %v785_v54, %v1317_v25 }
 0x3d7   : > { %788 = vst [vmem:[%s312_s13] sm:$0xff] %v787_v55 }
 0x3d8   : > { %1087 = shalt.err (!%p1084_p2)
}
 0x3d9   : > { %s1088_s10 = scalar_lea.hbm %s1433_s23, 128  ;;  %s1092_s19 = scalar_lea.hbm %s1483_s8, 256 }
 0x3da   : > { %p1089_p3 = scmp.ne.s32.totalorder %s1433_s23, %s1088_s10  ;;  %p1093_p8 = scmp.lt.u32.totalorder %s1433_s23, %s1483_s8 }
 0x3db   : > { %p1094_p10 = scmp.lt.u32.totalorder %s1092_s19, %s1088_s10  ;;  %p1096_p11 = scmp.lt.u32.totalorder %s1088_s10, %s1433_s23 }
 0x3dc   : > { %p1090_p4 = pnand %p1089_p3, %p1230_p5 }
 0x3dd   : > { %p1095_p9 = por %p1094_p10, %p1093_p8 }
 0x3de   : > { %p1091_p7 = pneg %p1090_p4 }
 0x3df   : > { %p1097_p12 = por %p1096_p11, %p1095_p9 }
 0x3e1   : > { %p1098_p13 = pnand %p1097_p12, %p1091_p7 }
 0x3e3   : > { %1101 = shalt.err (!%p1098_p13)
}
 0x3e4   : > { %1000 = dma.vmem_to_hbm [thread:$0]  (%p1230_p5), %s1435_s20, 128, %s1433_s23, %s790_s24  }
 0x3e5 PF: > { %p1012_p0 = scmp.ge.s32.totalorder %s1140_s30, 2  ;;  %s816_s22 = sand.u32 1, %s1128_s27  }
 0x3e6   : > { %s817_s25 = scalar_lea.sflag [#allocation3], %s816_s22 }
 0x3e7   : > { %p1007_p1 = pnand %p1012_p0, %p1234_p6 }
 0x3e9   : > { %1123 = dma.done.wait (!%p1007_p1), %s817_s25, 128  }
 0x3ea   : > { %1125 = vsyncadd (!%p1007_p1), %s817_s25, 4294967168  ;;  %p19_p2 = scmp.ge.s32.totalorder %s1217_s11, 4   ;;  %s1487_s27 = smov %s1132_s28 }
 0x3eb   : > { %s1488_s28 = smov %s1136_s29  ;;  %s1489_s29 = smov %s1228_s14 }
 0x3ec   : > { %s1490_s30 = smov %s1217_s11  ;;  %21 = sbr.rel (!%p19_p2) target bundleno = 4 (0x4), region = 92 }
 0x3f3   :  { %822 = vsyncpa [#allocation3], 1 }
 0x3f4   :  { %824 = vsyncpa [#allocation3 + $0x1], 1 }
 0x3f5   :  { %825 = vsyncpa [#allocation4], 1 }
 0x3f6   :  { %827 = vsyncpa [#allocation4 + $0x1], 1 }

</bundles_post_ra>
